<compile_context>
chip_gen: v7x
topology: tpu7x:2x2x1
jax: 0.10.0
libtpu: 0.0.40
codegen_flags: <defaults>
</compile_context>

<pallas_src>
from functools import partial

import jax
import jax.numpy as jnp
from jax.experimental import pallas as pl
from jax.experimental.pallas import tpu as pltpu


def _conv1d_deriv_kernel(w_ref, x_ref, o_ref, *, K, L_pad):
    # w_ref: SMEM (K,) float32 taps, already scaled by 1/resol.
    # x_ref: VMEM (TILE_N, L_pad) input tile.
    # o_ref: VMEM (TILE_N, L_pad) output tile (lane-dense; invalid tail cropped in wrapper).
    x = x_ref[...]
    acc = x * w_ref[0]
    for k in range(1, K):  # static unrolled loop over the K filter taps
        # Circular left-shift by k lanes via the XLU: roll by (L_pad - k) == roll by -k.
        # Wrapped lanes only land at positions >= Lout, which are cropped in the wrapper.
        acc = acc + pltpu.roll(x, shift=L_pad - k, axis=1) * w_ref[k]
    o_ref[...] = acc.astype(o_ref.dtype)


def _round_up(v, m):
    return ((v + m - 1) // m) * m


def _choose_tile_n(N, L_pad, itemsize, vmem_budget_bytes):
    """Largest multiple-of-8 row tile whose double-buffered in+out tiles fit the budget."""
    n_pad8 = _round_up(N, 8)
    # Auto-pipelining double-buffers each operand: 2 buffers * (input tile + output tile).
    bytes_per_row = 2 * 2 * L_pad * itemsize
    max_rows = max(8, (vmem_budget_bytes // bytes_per_row) // 8 * 8)
    return min(n_pad8, max_rows)


def conv1d_derivative(x, der_filter, resol, *, tile_n=None,
                      vmem_budget_bytes=8 * 1024 * 1024):
    """x: (N, 1, L), der_filter: (1, 1, K), resol: static scalar -> (N, 1, L-K+1)."""
    N, C, L = x.shape
    assert C == 1, "Conv1dDerivative has a single input channel"
    K = der_filter.shape[-1]
    Lout = L - K + 1
    assert Lout >= 1

    # Fold 1/resol into the taps (K scalars -> removes one full-tile VPU multiply).
    w = der_filter.reshape(K).astype(jnp.float32) * (1.0 / float(resol))

    itemsize = jnp.dtype(x.dtype).itemsize
    # Lane-dense layout: round the lane (L) dim up to a multiple of 128.
    L_pad = _round_up(L, 128)

    if tile_n is None:
        tile_n = _choose_tile_n(N, L_pad, itemsize, vmem_budget_bytes)
    tile_n = max(8, (tile_n // 8) * 8)
    N_pad = _round_up(N, tile_n)
    grid = (N_pad // tile_n,)

    x2d = x.reshape(N, L)
    x_padded = jnp.pad(x2d, ((0, N_pad - N), (0, L_pad - L)))

    cost = pl.CostEstimate(
        flops=2 * K * N_pad * L_pad,
        transcendentals=0,
        bytes_accessed=itemsize * 2 * N_pad * L_pad + 4 * K,
    )

    out_padded = pl.pallas_call(
        partial(_conv1d_deriv_kernel, K=K, L_pad=L_pad),
        out_shape=jax.ShapeDtypeStruct((N_pad, L_pad), x.dtype),
        grid=grid,
        in_specs=[
            pl.BlockSpec(memory_space=pltpu.SMEM),            # K filter taps (scalars)
            pl.BlockSpec((tile_n, L_pad), lambda i: (i, 0)),  # row tile of the input
        ],
        out_specs=pl.BlockSpec((tile_n, L_pad), lambda i: (i, 0)),
        compiler_params=pltpu.CompilerParams(
            dimension_semantics=("parallel",),                # rows split across TCs on v7x
        ),
        cost_estimate=cost,
    )(w, x_padded)

    # Crop row padding and the (K-1 + lane-padding) invalid tail columns.
    return out_padded[:N, :Lout].reshape(N, 1, Lout)


def _reference(x, der_filter, resol):
    # Plain-JAX valid cross-correlation (matches torch.nn.Conv1d, padding=0, no bias).
    out = jax.lax.conv_general_dilated(
        x, der_filter,
        window_strides=(1,), padding="VALID",
        dimension_numbers=("NCH", "OIH", "NCH"),
    )
    return out / resol


if __name__ == "__main__":
    # Deterministic parameters (as Conv1dDerivative.__init__ would set them):
    # central-difference derivative filter, shape (out_ch=1, in_ch=1, K=3).
    der_filter = jnp.array([[[-1.0, 0.0, 1.0]]], dtype=jnp.float32)
    resol = 2.0 * 0.01  # e.g. 2*dt

    key = jax.random.PRNGKey(0)
    k0, k1 = jax.random.split(key)

    # Small deterministic input, NCW like torch.nn.Conv1d: (N=4, C=1, L=16).
    x = jax.random.normal(k0, (4, 1, 16), dtype=jnp.float32)
    out = jax.block_until_ready(conv1d_derivative(x, der_filter, resol))
    ref = jax.block_until_ready(_reference(x, der_filter, resol))
    assert out.shape == ref.shape == (4, 1, 14)
    assert jnp.allclose(out, ref, atol=1e-4, rtol=1e-5)

    # Second case exercising the grid (several row tiles) and the lane padding /
    # cropping path (L not a multiple of 128, N not a multiple of the tile).
    x2 = jax.random.normal(k1, (20, 1, 200), dtype=jnp.float32)
    out2 = jax.block_until_ready(conv1d_derivative(x2, der_filter, resol, tile_n=8))
    ref2 = jax.block_until_ready(_reference(x2, der_filter, resol))
    assert out2.shape == ref2.shape == (20, 1, 198)
    assert jnp.allclose(out2, ref2, atol=1e-4, rtol=1e-5)

    print("KERNEL_OK")
</pallas_src>

<mosaic_0001>
module attributes {stable_mosaic.version = 11 : i64} {
  func.func @_conv1d_deriv_kernel(%arg0: i32, %arg1: memref<3xf32, #tpu.memory_space<smem>>, %arg2: memref<8x128xf32, #tpu.memory_space<vmem>>, %arg3: memref<8x128xf32, #tpu.memory_space<vmem>>) attributes {dimension_semantics = [#tpu.dimension_semantics<parallel>], iteration_bounds = array<i64: 1>, scalar_prefetch = 0 : i64, scratch_operands = 0 : i64, tpu.core_type = #tpu.core_type<tc>, window_params = [{transform_indices = @transform_0, window_bounds = array<i64: 3>}, {transform_indices = @transform_1, window_bounds = array<i64: 8, 128>}, {transform_indices = @transform_2, window_bounds = array<i64: 8, 128>}]} {
    %c0 = arith.constant 0 : index
    %c0_0 = arith.constant 0 : index
    %0 = vector.load %arg2[%c0, %c0_0] : memref<8x128xf32, #tpu.memory_space<vmem>>, vector<8x128xf32>
    %c0_1 = arith.constant 0 : index
    %1 = memref.load %arg1[%c0_1] : memref<3xf32, #tpu.memory_space<smem>>
    %2 = vector.broadcast %1 : f32 to vector<8x128xf32>
    %3 = arith.mulf %0, %2 : vector<8x128xf32>
    %c127_i32 = arith.constant 127 : i32
    %4 = tpu.dynamic_rotate %0 by %c127_i32 dim 1 : vector<8x128xf32>, i32 -> vector<8x128xf32>
    %c1 = arith.constant 1 : index
    %5 = memref.load %arg1[%c1] : memref<3xf32, #tpu.memory_space<smem>>
    %6 = vector.broadcast %5 : f32 to vector<8x128xf32>
    %7 = arith.mulf %4, %6 : vector<8x128xf32>
    %8 = arith.addf %3, %7 : vector<8x128xf32>
    %c126_i32 = arith.constant 126 : i32
    %9 = tpu.dynamic_rotate %0 by %c126_i32 dim 1 : vector<8x128xf32>, i32 -> vector<8x128xf32>
    %c2 = arith.constant 2 : index
    %10 = memref.load %arg1[%c2] : memref<3xf32, #tpu.memory_space<smem>>
    %11 = vector.broadcast %10 : f32 to vector<8x128xf32>
    %12 = arith.mulf %9, %11 : vector<8x128xf32>
    %13 = arith.addf %8, %12 : vector<8x128xf32>
    %c0_2 = arith.constant 0 : index
    %c0_3 = arith.constant 0 : index
    %14 = vector.load %arg3[%c0_2, %c0_3] : memref<8x128xf32, #tpu.memory_space<vmem>>, vector<8x128xf32>
    tpu.vector_store %arg3[%c0_2, %c0_3], %13 {strides = array<i32>} : memref<8x128xf32, #tpu.memory_space<vmem>>, vector<8x128xf32>,
    return
  }
  func.func @transform_0(%arg0: i32) -> i32 {
    %c0_i32 = arith.constant 0 : i32
    %c0_i32_0 = arith.constant 0 : i32
    return %c0_i32 : i32
  }
  func.func @transform_1(%arg0: i32) -> (i32, i32) {
    %c0_i32 = arith.constant 0 : i32
    %c0_i32_0 = arith.constant 0 : i32
    return %arg0, %c0_i32 : i32, i32
  }
  func.func @transform_2(%arg0: i32) -> (i32, i32) {
    %c0_i32 = arith.constant 0 : i32
    %c0_i32_0 = arith.constant 0 : i32
    return %arg0, %c0_i32 : i32, i32
  }
}

</mosaic_0001>

<bundles_post_ra>
// kernel: tpu_custom_call.1
= control target key start
LH: loop header
LB: loop body
LE: loop exit
PB: predicated region body
PF: predicated region fallthrough
CT: control target
= control target key end

     0   :  { %7 = vsyncpa [#allocation5], 0  ;;  %s191_s0 = inlined_call_operand.hbm [shape: f32[3], index: 0, kind: input, shape index: {}]   ;;  %s192_s1 = inlined_call_operand.hbm [shape: f32[8,128], index: 1, kind: input, shape index: {}]   ;;  %s193_s2 = inlined_call_operand.hbm [shape: f32[8,128], index: 2, kind: output, shape index: {}]  }
   0x1   :  { %8 = vsyncpa [#allocation3], 0 }
   0x2   :  { %9 = vsyncpa [#allocation4], 0  ;;  %s75_s11 = scalar_lea.hbm %s191_s0, 16 }
   0x3   :  { %p76_p0 = scmp.ne.s32.totalorder %s191_s0, %s75_s11  ;;  %p79_p1 = scmp.lt.u32.totalorder %s75_s11, %s191_s0 }
   0x5   :  { %p81_p2 = pnand %p79_p1, %p76_p0 }
   0x7   :  { %84 = shalt.err (!%p81_p2)
}
   0x8   :  { %s135_s16 = smov [#allocation2]   ;;  %s136_s19 = smov [#allocation6]  }
   0x9   :  { %17 = dma.hbm_to_smem %s191_s0, 16, %s135_s16, [#allocation5]  }
   0xa   :  { %s24_s20 = sshll.u32 %s136_s19, 4  ;;  %s85_s23 = scalar_lea.hbm %s192_s1, 128  ;;  %s25_s20 = int_to_ptr.vmem [resolvable:$true] %s24_s20 }
   0xb   :  { %p86_p3 = scmp.ne.s32.totalorder %s192_s1, %s85_s23  ;;  %p89_p4 = scmp.lt.u32.totalorder %s85_s23, %s192_s1 }
   0xd   :  { %p91_p5 = pnand %p89_p4, %p86_p3 }
   0xf   :  { %94 = shalt.err (!%p91_p5)
}
  0x10   :  { %s95_s28 = scalar_lea.vmem %s25_s20, 128  ;;  %p100_p7 = scmp.lt.s32.totalorder %s25_s20, %s25_s20 }
  0x11   :  { %p96_p6 = scmp.ne.s32.totalorder %s25_s20, %s95_s28  ;;  %p101_p8 = scmp.lt.s32.totalorder %s95_s28, %s95_s28 }
  0x13   :  { %p102_p9 = por %p101_p8, %p100_p7 }
  0x15   :  { %p103_p10 = pnand %p102_p9, %p96_p6 }
  0x17   :  { %106 = shalt.err (!%p103_p10)
}
  0x18   :  { %27 = dma.hbm_to_vmem [thread:$0]  %s192_s1, 128, %s25_s20, [#allocation3]  }
  0x19   :  { %129 = dma.done.wait [#allocation5], 16  }
  0x1a   :  { %130 = vsyncadd [#allocation5], 4294967280 }
  0x1b   :  { %131 = dma.done.wait [#allocation3], 128  }
  0x1c   :  { %132 = vsyncadd [#allocation3], 4294967168 }
  0x1d   :  { %34 = sfence }
  0x1e   :  { %v35_v0 = vld [vmem:[#allocation6] sm:$0xff]  ;;  %s137_s30 = smov 127   ;;  %s138_s3 = smov 126  }
  0x1f   :  { %39 = vrot.lane.b32.xlu0 %v35_v0, %s137_s30  ;;  %s36_s4 = sld [smem:[#allocation2]]  ;;  %s68_s5 = sld [smem:[#allocation2 + $0x1]] }
  0x20   :  { %s69_s6 = sld [smem:[#allocation2 + $0x2]]  ;;  %s139_s1 = smov [#allocation7]  }
  0x21   :  { %s58_s7 = sshll.u32 %s139_s1, 4  ;;  %s59_s7 = int_to_ptr.vmem [resolvable:$true] %s58_s7 }
  0x22   :  { %s107_s8 = scalar_lea.vmem %s59_s7, 128  ;;  %p112_p12 = scmp.lt.s32.totalorder %s59_s7, %s59_s7 }
  0x23   :  { %45 = vrot.lane.b32.xlu0 %v35_v0, %s138_s3  ;;  %p108_p11 = scmp.ne.s32.totalorder %s59_s7, %s107_s8  ;;  %p113_p13 = scmp.lt.s32.totalorder %s107_s8, %s107_s8 }
  0x25   :  { %v37_v1 = vstv %s36_s4  ;;  %v42_v2 = vstv %s68_s5  ;;  %p114_p0 = por %p113_p13, %p112_p12 }
  0x26   :  { %v38_v4 = vmul.f32 %v37_v1, %v35_v0  ;;  %v48_v6 = vstv %s69_s6 }
  0x27   :  { %p115_p1 = pnand %p114_p0, %p108_p11 }
  0x91   :  { %v40_v3 = vpop.permute.xlu0 %39 }
  0x92   :  { %v43_v5 = vmul.f32 %v42_v2, %v40_v3 }
  0x94   :  { %v44_v8 = vadd.f32 %v43_v5, %v38_v4 }
  0x95   :  { %v46_v7 = vpop.permute.xlu0 %45 }
  0x96   :  { %v49_v9 = vmul.f32 %v48_v6, %v46_v7 }
  0x98   :  { %v50_v10 = vadd.f32 %v49_v9, %v44_v8 }
  0x9a   :  { %51 = vst [vmem:[#allocation7] sm:$0xff] %v50_v10 }
  0x9b   :  { %118 = shalt.err (!%p115_p1)
}
  0x9c   :  { %s119_s11 = scalar_lea.hbm %s193_s2, 128 }
  0x9d   :  { %p120_p2 = scmp.ne.s32.totalorder %s193_s2, %s119_s11  ;;  %p123_p3 = scmp.lt.u32.totalorder %s119_s11, %s193_s2 }
  0x9f   :  { %p125_p4 = pnand %p123_p3, %p120_p2 }
  0xa1   :  { %128 = shalt.err (!%p125_p4)
}
  0xa2   :  { %61 = dma.vmem_to_hbm [thread:$0]  %s59_s7, 128, %s193_s2, [#allocation4]  }
  0xa3   :  { %133 = dma.done.wait [#allocation4], 128  }
  0xa4   :  { %134 = vsyncadd [#allocation4], 4294967168 }
  0xa5   :  { %65 = vsyncpa [#allocation3], 1 }
  0xa6   :  { %66 = vsyncpa [#allocation4], 1 }
  0xa7   :  { %67 = vsyncpa [#allocation5], 1 }

</bundles_post_ra>
